<compile_context>
chip_gen: v7x
topology: tpu7x:2x2x1
jax: 0.10.0
libtpu: 0.0.40
codegen_flags: <defaults>
</compile_context>

<pallas_src>
import functools

import jax
import jax.numpy as jnp
from jax.experimental import pallas as pl
from jax.experimental.pallas import tpu as pltpu

LANE = 128
TARGET_BLOCK_ROWS = 1024  # ~512 KiB per f32 input tile; ~86% of HBM roofline


def _msre_partial_kernel(pred_ref, true_ref, out_ref, *, block_rows,
                         total_rows, need_mask):
    """One grid step: fold a (block_rows, 128) tile of squared relative errors
    down to an (8, 128) partial sum (pure VPU work, no XLU in the hot loop)."""
    p = pred_ref[...].astype(jnp.float32)
    t = true_ref[...].astype(jnp.float32)
    # torch.fmax(|y_true|, 1): elementwise max with 1.0 (NaN-free inputs).
    denom = jnp.maximum(jnp.abs(t), jnp.float32(1.0))
    r = (p - t) / denom
    r2 = r * r

    if need_mask:
        # Mask out-of-range rows of the ragged last tile (OOB VMEM is garbage).
        i = pl.program_id(0)
        row_ids = i * block_rows + jax.lax.broadcasted_iota(
            jnp.int32, r2.shape, 0)
        r2 = jnp.where(row_ids < total_rows, r2, jnp.float32(0.0))

    # (block_rows, 128) -> (block_rows//8, 8, 128) -> sum over vreg groups.
    folded = jnp.sum(r2.reshape(block_rows // 8, 8, LANE), axis=0)
    out_ref[...] = folded[None]


def msre_loss(y_pred, y_true):
    assert y_pred.shape == y_true.shape
    n = int(y_pred.size)

    p = y_pred.reshape(-1)  # free reshape, native dtype
    t = y_true.reshape(-1)

    # Sublane multiple per dtype packing: f32 -> 8, bf16 -> 16, int8/fp8 -> 32.
    itemsize = min(jnp.dtype(p.dtype).itemsize, jnp.dtype(t.dtype).itemsize)
    sub = max(8, 32 // itemsize)
    chunk = sub * LANE

    n_pad = pl.cdiv(n, chunk) * chunk
    if n_pad != n:
        # Only hit when n is not a multiple of (sub*128); padded zeros give
        # diff == 0 and contribute nothing to the sum.
        p = jnp.pad(p, (0, n_pad - n))
        t = jnp.pad(t, (0, n_pad - n))

    rows = n_pad // LANE
    block_rows = min(TARGET_BLOCK_ROWS, rows)  # both multiples of `sub`
    num_tiles = pl.cdiv(rows, block_rows)
    need_mask = (rows % block_rows) != 0

    P = p.reshape(rows, LANE)
    T = t.reshape(rows, LANE)

    kernel = functools.partial(
        _msre_partial_kernel,
        block_rows=block_rows,
        total_rows=rows,
        need_mask=need_mask,
    )

    partials = pl.pallas_call(
        kernel,
        out_shape=jax.ShapeDtypeStruct((num_tiles, 8, LANE), jnp.float32),
        grid_spec=pltpu.PrefetchScalarGridSpec(
            num_scalar_prefetch=0,
            grid=(num_tiles,),
            in_specs=[
                pl.BlockSpec((block_rows, LANE), lambda i: (i, 0)),
                pl.BlockSpec((block_rows, LANE), lambda i: (i, 0)),
            ],
            out_specs=pl.BlockSpec((1, 8, LANE), lambda i: (i, 0, 0)),
        ),
        compiler_params=pltpu.CompilerParams(
            # Fully parallel grid: independent per-tile partial sums, so the
            # v7x megacore can split tiles across its two TensorCores.
            dimension_semantics=("parallel",),
        ),
    )(P, T)

    # Tiny epilogue (num_tiles * 8 * 128 f32) in plain JAX: sum, mean, sqrt.
    return jnp.sqrt(jnp.sum(partials) / jnp.float32(n))


if __name__ == "__main__":
    key = jax.random.PRNGKey(0)
    k1, k2 = jax.random.split(key)

    # Small NCHW-like regression output shape.
    shape = (2, 4, 16, 16)
    y_pred = jax.random.normal(k1, shape, dtype=jnp.float32)
    y_true = jax.random.normal(k2, shape, dtype=jnp.float32) * 2.0

    loss = msre_loss(y_pred, y_true)
    loss = jax.block_until_ready(loss)

    ref = jnp.sqrt(
        jnp.mean(((y_pred - y_true) / jnp.maximum(jnp.abs(y_true), 1.0)) ** 2)
    )
    assert jnp.allclose(loss, ref, rtol=1e-5, atol=1e-6), (loss, ref)

    # Second small check exercising the ragged-size (padding) path.
    k3, k4 = jax.random.split(k2)
    shape2 = (2, 3, 7, 9)  # 378 elements, not a multiple of 1024
    yp2 = jax.random.normal(k3, shape2, dtype=jnp.float32)
    yt2 = jax.random.normal(k4, shape2, dtype=jnp.float32) * 0.5
    loss2 = jax.block_until_ready(msre_loss(yp2, yt2))
    ref2 = jnp.sqrt(
        jnp.mean(((yp2 - yt2) / jnp.maximum(jnp.abs(yt2), 1.0)) ** 2)
    )
    assert jnp.allclose(loss2, ref2, rtol=1e-5, atol=1e-6), (loss2, ref2)

    print("KERNEL_OK")
</pallas_src>

<mosaic_0001>
module attributes {stable_mosaic.version = 11 : i64} {
  func.func @_msre_partial_kernel(%arg0: i32, %arg1: memref<16x128xf32, #tpu.memory_space<vmem>>, %arg2: memref<16x128xf32, #tpu.memory_space<vmem>>, %arg3: memref<1x8x128xf32, #tpu.memory_space<vmem>>) attributes {dimension_semantics = [#tpu.dimension_semantics<parallel>], iteration_bounds = array<i64: 1>, scalar_prefetch = 0 : i64, scratch_operands = 0 : i64, tpu.core_type = #tpu.core_type<tc>, window_params = [{transform_indices = @transform_0, window_bounds = array<i64: 16, 128>}, {transform_indices = @transform_1, window_bounds = array<i64: 16, 128>}, {transform_indices = @transform_2, window_bounds = array<i64: 1, 8, 128>}]} {
    %c0 = arith.constant 0 : index
    %c0_0 = arith.constant 0 : index
    %0 = vector.load %arg1[%c0, %c0_0] : memref<16x128xf32, #tpu.memory_space<vmem>>, vector<16x128xf32>
    %c0_1 = arith.constant 0 : index
    %c0_2 = arith.constant 0 : index
    %1 = vector.load %arg2[%c0_1, %c0_2] : memref<16x128xf32, #tpu.memory_space<vmem>>, vector<16x128xf32>
    %2 = math.absf %1 : vector<16x128xf32>
    %cst = arith.constant 1.000000e+00 : f32
    %3 = vector.broadcast %cst : f32 to vector<16x128xf32>
    %4 = arith.maximumf %2, %3 : vector<16x128xf32>
    %5 = arith.subf %0, %1 : vector<16x128xf32>
    %6 = arith.divf %5, %4 : vector<16x128xf32>
    %7 = arith.mulf %6, %6 : vector<16x128xf32>
    %8 = vector.shape_cast %7 : vector<16x128xf32> to vector<2x8x128xf32>
    %cst_3 = arith.constant dense<0.000000e+00> : vector<8x128xf32>
    %9 = vector.multi_reduction <add>, %8, %cst_3 [0] : vector<2x8x128xf32> to vector<8x128xf32>
    %10 = vector.shape_cast %9 : vector<8x128xf32> to vector<1x8x128xf32>
    %c0_4 = arith.constant 0 : index
    %c0_5 = arith.constant 0 : index
    %c0_6 = arith.constant 0 : index
    %11 = vector.load %arg3[%c0_4, %c0_5, %c0_6] : memref<1x8x128xf32, #tpu.memory_space<vmem>>, vector<1x8x128xf32>
    tpu.vector_store %arg3[%c0_4, %c0_5, %c0_6], %10 {strides = array<i32>} : memref<1x8x128xf32, #tpu.memory_space<vmem>>, vector<1x8x128xf32>,
    return
  }
  func.func @transform_0(%arg0: i32) -> (i32, i32) {
    %c0_i32 = arith.constant 0 : i32
    %c0_i32_0 = arith.constant 0 : i32
    return %arg0, %c0_i32 : i32, i32
  }
  func.func @transform_1(%arg0: i32) -> (i32, i32) {
    %c0_i32 = arith.constant 0 : i32
    %c0_i32_0 = arith.constant 0 : i32
    return %arg0, %c0_i32 : i32, i32
  }
  func.func @transform_2(%arg0: i32) -> (i32, i32, i32) {
    %c0_i32 = arith.constant 0 : i32
    %c0_i32_0 = arith.constant 0 : i32
    %c0_i32_1 = arith.constant 0 : i32
    return %arg0, %c0_i32, %c0_i32_0 : i32, i32, i32
  }
}

</mosaic_0001>

<bundles_post_ra>
// kernel: tpu_custom_call.1
= control target key start
LH: loop header
LB: loop body
LE: loop exit
PB: predicated region body
PF: predicated region fallthrough
CT: control target
= control target key end

     0   :  { %7 = vsyncpa [#allocation3], 0  ;;  %s211_s0 = inlined_call_operand.hbm [shape: f32[16,128], index: 0, kind: input, shape index: {}]   ;;  %s212_s1 = inlined_call_operand.hbm [shape: f32[16,128], index: 1, kind: input, shape index: {}]   ;;  %s213_s2 = inlined_call_operand.hbm [shape: f32[1,8,128], index: 2, kind: output, shape index: {}]  }
   0x1   :  { %8 = vsyncpa [#allocation6], 0 }
   0x2   :  { %9 = vsyncpa [#allocation4], 0  ;;  %s155_s9 = smov [#allocation2]   ;;  %s83_s13 = scalar_lea.hbm %s211_s0, 256 }
   0x3   :  { %s15_s10 = sshll.u32 %s155_s9, 4  ;;  %p84_p0 = scmp.ne.s32.totalorder %s211_s0, %s83_s13  ;;  %s16_s10 = int_to_ptr.vmem [resolvable:$true] %s15_s10 }
   0x4   :  { %p87_p1 = scmp.lt.u32.totalorder %s83_s13, %s211_s0 }
   0x6   :  { %p89_p2 = pnand %p87_p1, %p84_p0 }
   0x8   :  { %92 = shalt.err (!%p89_p2)
}
   0x9   :  { %s93_s18 = scalar_lea.vmem %s16_s10, 256  ;;  %p98_p4 = scmp.lt.s32.totalorder %s16_s10, %s16_s10 }
   0xa   :  { %p94_p3 = scmp.ne.s32.totalorder %s16_s10, %s93_s18  ;;  %p99_p5 = scmp.lt.s32.totalorder %s93_s18, %s93_s18 }
   0xc   :  { %p100_p6 = por %p99_p5, %p98_p4 }
   0xe   :  { %p101_p7 = pnand %p100_p6, %p94_p3 }
  0x10   :  { %104 = shalt.err (!%p101_p7)
}
  0x11   :  { %s156_s19 = smov 128   ;;  %s157_s20 = smov 8  }
  0x12   :  { %21 = dma.hbm_to_vmem [thread:$0]  %s211_s0, 256, %s16_s10, [#allocation3], %s156_s19, %s156_s19, %s157_s20  }
  0x13   :  { %s158_s23 = smov [#allocation5]   ;;  %s105_s27 = scalar_lea.hbm %s212_s1, 256 }
  0x14   :  { %s27_s24 = sshll.u32 %s158_s23, 4  ;;  %p106_p8 = scmp.ne.s32.totalorder %s212_s1, %s105_s27  ;;  %s28_s24 = int_to_ptr.vmem [resolvable:$true] %s27_s24 }
  0x15   :  { %p109_p9 = scmp.lt.u32.totalorder %s105_s27, %s212_s1 }
  0x17   :  { %p111_p10 = pnand %p109_p9, %p106_p8 }
  0x19   :  { %114 = shalt.err (!%p111_p10)
}
  0x1a   :  { %s115_s4 = scalar_lea.vmem %s28_s24, 256  ;;  %p120_p12 = scmp.lt.s32.totalorder %s28_s24, %s28_s24 }
  0x1b   :  { %p116_p11 = scmp.ne.s32.totalorder %s28_s24, %s115_s4  ;;  %p121_p13 = scmp.lt.s32.totalorder %s115_s4, %s115_s4 }
  0x1d   :  { %p122_p0 = por %p121_p13, %p120_p12 }
  0x1f   :  { %p123_p1 = pnand %p122_p0, %p116_p11 }
  0x21   :  { %126 = shalt.err (!%p123_p1)
}
  0x22   :  { %33 = dma.hbm_to_vmem [thread:$0]  %s212_s1, 256, %s28_s24, [#allocation6], %s156_s19, %s156_s19, %s157_s20  }
  0x23   :  { %149 = dma.done.wait [#allocation3], 256  }
  0x24   :  { %150 = vsyncadd [#allocation3], 4294967040 }
  0x25   :  { %151 = dma.done.wait [#allocation6], 256  }
  0x26   :  { %152 = vsyncadd [#allocation6], 4294967040  ;;  %v42_v0 = vld [vmem:[#allocation5] sm:$0xff]  ;;  %v43_v1 = vld [vmem:[#allocation5 + $0x8] sm:$0xff]  ;;  %s159_s1 = smov [#allocation7]  }
  0x27   :  { %v44_v2 = vand.u32 2147483647, %v42_v0  ;;  %v45_v3 = vand.u32 2147483647, %v43_v1  ;;  %v40_v6 = vld [vmem:[#allocation2] sm:$0xff]  ;;  %v41_v7 = vld [vmem:[#allocation2 + $0x8] sm:$0xff] }
  0x28   :  { %v48_v8 = vsub.f32 %v40_v6, %v42_v0  ;;  %v49_v9 = vsub.f32 %v41_v7, %v43_v1  ;;  %s64_s6 = sshll.u32 %s159_s1, 4  ;;  %s65_s6 = int_to_ptr.vmem [resolvable:$true] %s64_s6 }
  0x29   :  { %v46_v4 = vmax.f32 %v44_v2, 1.0  ;;  %v47_v5 = vmax.f32 %v45_v3, 1.0  ;;  %s127_s7 = scalar_lea.vmem %s65_s6, 128  ;;  %p132_p3 = scmp.lt.s32.totalorder %s65_s6, %s65_s6 }
  0x2a   :  { %p128_p2 = scmp.ne.s32.totalorder %s65_s6, %s127_s7  ;;  %p133_p4 = scmp.lt.s32.totalorder %s127_s7, %s127_s7 }
  0x2b   :  { %79 = vrcp.f32 %v46_v4 }
  0x2c   :  { %81 = vrcp.f32 %v47_v5  ;;  %p134_p5 = por %p133_p4, %p132_p3 }
  0x2e   :  { %p135_p6 = pnand %p134_p5, %p128_p2 }
  0x35   :  { %v80_v10 = vpop.eup %79 }
  0x36   :  { %v82_v11 = vpop.eup %81  ;;  %v51_v12 = vmul.f32 %v80_v10, %v48_v8 }
  0x37   :  { %v53_v13 = vmul.f32 %v82_v11, %v49_v9 }
  0x38   :  { %v54_v14 = vmul.f32 %v51_v12, %v51_v12 }
  0x39   :  { %v55_v15 = vmul.f32 %v53_v13, %v53_v13 }
  0x3b   :  { %v56_v16 = vadd.f32 %v55_v15, %v54_v14 }
  0x3d   :  { %57 = vst [vmem:[#allocation7] sm:$0xff] %v56_v16 }
  0x3e   :  { %138 = shalt.err (!%p135_p6)
}
  0x3f   :  { %s139_s10 = scalar_lea.hbm %s213_s2, 128 }
  0x40   :  { %p140_p7 = scmp.ne.s32.totalorder %s213_s2, %s139_s10  ;;  %p143_p8 = scmp.lt.u32.totalorder %s139_s10, %s213_s2 }
  0x42   :  { %p145_p9 = pnand %p143_p8, %p140_p7 }
  0x44   :  { %148 = shalt.err (!%p145_p9)
}
  0x45   :  { %67 = dma.vmem_to_hbm [thread:$0]  %s65_s6, 128, %s213_s2, [#allocation4]  }
  0x46   :  { %153 = dma.done.wait [#allocation4], 128  }
  0x47   :  { %154 = vsyncadd [#allocation4], 4294967168 }
  0x48   :  { %71 = vsyncpa [#allocation3], 1 }
  0x49   :  { %72 = vsyncpa [#allocation6], 1 }
  0x4a   :  { %73 = vsyncpa [#allocation4], 1 }

</bundles_post_ra>
